<compile_context>
chip_gen: v7x
topology: tpu7x:2x2x1
jax: 0.10.0
libtpu: 0.0.40
codegen_flags: <defaults>
</compile_context>

<pallas_src>
import jax
import jax.numpy as jnp
from jax.experimental import pallas as pl
from jax.experimental.pallas import tpu as pltpu

GLOBAL_STATE_LEN = 30              # IN
HIDDEN = 64                        # OUT
_ROWS_PER_STEP = 16384             # batch rows moved per grid step (~6 MiB HBM)
_VMEM_LIMIT_BYTES = 40 * 1024 * 1024   # fits v7x's 64 MiB physical VMEM with headroom


def _default_pack():
    """Batch rows fused per kernel row.  4 on v6e/v7x, 2 on v5-class chips."""
    try:
        kind = jax.devices()[0].device_kind.lower()
        if "v5" in kind:
            return 2
    except Exception:
        pass
    return 4


def pack_params(w, b, pack=None):
    """Precompute block-diagonal weights / tiled bias ONCE per model.

    w: [30, 64] (any float dtype), b: [64]
    -> (w_packed [30*pack, 64*pack] f32, b_packed [1, 64*pack] f32)
    """
    if pack is None:
        pack = _default_pack()
    w_f32 = w.astype(jnp.float32)
    w_packed = jax.scipy.linalg.block_diag(*([w_f32] * pack))       # [30p, 64p]
    b_packed = jnp.tile(b.astype(jnp.float32), pack).reshape(1, pack * HIDDEN)
    return w_packed, b_packed


def _linear_relu_kernel(x_ref, w_ref, b_ref, o_ref):
    # x_ref: [tb, 30*pack] (native dtype), w_ref: [30*pack, 64*pack] f32,
    # b_ref: [1, 64*pack] f32, o_ref: [tb, 64*pack] f32.
    x = x_ref[...].astype(jnp.float32)                               # x.float()
    y = jnp.dot(x, w_ref[...], preferred_element_type=jnp.float32) + b_ref[...]
    o_ref[...] = jnp.maximum(y, 0.0)                                 # ReLU


def global_state_layer(x, w_packed, b_packed):
    """relu(x.float() @ w + b) -> [B, 64] f32.

    x: [B, 30] in its narrowest native dtype (cast to f32 happens in VMEM).
    w_packed / b_packed come from pack_params().
    """
    B = x.shape[0]
    in_p, out_p = w_packed.shape                    # (30*pack, 64*pack)
    pack = in_p // GLOBAL_STATE_LEN

    # Pad batch to a multiple of `pack`, fold pack rows into one kernel row.
    Bp = -(-B // pack) * pack
    if Bp != B:
        x = jnp.pad(x, ((0, Bp - B), (0, 0)))
    Bh = Bp // pack
    x2 = x.reshape(Bh, in_p)                        # contiguous view, free

    # Batch tile: large enough to amortize per-step overhead, capped so we get
    # >=2 grid steps when possible (two v7x TensorCores), 8-aligned for layout.
    tb_max = max(8, _ROWS_PER_STEP // pack)
    if Bh <= 8:
        tb = Bh                                     # single (possibly tiny) step
    else:
        half = -(-Bh // 2)                          # cdiv(Bh, 2)
        half = -(-half // 8) * 8                    # round up to multiple of 8
        tb = min(tb_max, half)
    grid = (pl.cdiv(Bh, tb),)

    itemsize = jnp.dtype(x.dtype).itemsize
    cost = pl.CostEstimate(
        flops=2 * Bh * in_p * out_p,                # includes block-diag waste (hint)
        transcendentals=0,
        bytes_accessed=(Bh * in_p * itemsize        # x
                        + in_p * out_p * 4          # w_packed
                        + out_p * 4                 # b_packed
                        + Bh * out_p * 4),          # out
    )

    out2 = pl.pallas_call(
        _linear_relu_kernel,
        out_shape=jax.ShapeDtypeStruct((Bh, out_p), jnp.float32),
        grid=grid,
        in_specs=[
            pl.BlockSpec((tb, in_p), lambda i: (i, 0)),      # batch-tiled x
            pl.BlockSpec((in_p, out_p), lambda i: (0, 0)),   # VMEM-resident W
            pl.BlockSpec((1, out_p), lambda i: (0, 0)),      # VMEM-resident b
        ],
        out_specs=pl.BlockSpec((tb, out_p), lambda i: (i, 0)),
        compiler_params=pltpu.CompilerParams(
            dimension_semantics=("parallel",),       # batch rows are independent
            vmem_limit_bytes=_VMEM_LIMIT_BYTES,      # allow the bigger tiles
        ),
        cost_estimate=cost,
    )(x2, w_packed, b_packed)

    out = out2.reshape(Bp, HIDDEN)                   # free view back to [B(+pad), 64]
    if Bp != B:
        out = out[:B]
    return out


def init_params(key):
    """Deterministic init mimicking nn.Linear defaults (uniform +/- 1/sqrt(fan_in))."""
    kw, kb = jax.random.split(key)
    bound = 1.0 / jnp.sqrt(jnp.float32(GLOBAL_STATE_LEN))
    # PyTorch weight is [OUT, IN]; we store transposed [IN, OUT] for the kernel.
    w = jax.random.uniform(
        kw, (GLOBAL_STATE_LEN, HIDDEN), jnp.float32, minval=-bound, maxval=bound
    )
    b = jax.random.uniform(
        kb, (HIDDEN,), jnp.float32, minval=-bound, maxval=bound
    )
    return w, b


if __name__ == "__main__":
    key = jax.random.PRNGKey(0)
    kx, kp = jax.random.split(key)
    w, b = init_params(kp)

    # Hoisted: packed weights/bias built once, reused across forward passes.
    w_packed, b_packed = pack_params(w, b)

    ok = True
    # Tiny batch (module-typical) plus an odd batch to exercise pad + partial tiles.
    for batch in (2, 37):
        kx, sub = jax.random.split(kx)
        x = jax.random.normal(sub, (batch, GLOBAL_STATE_LEN), jnp.float32)
        out = global_state_layer(x, w_packed, b_packed)
        jax.block_until_ready(out)
        ref = jnp.maximum(x.astype(jnp.float32) @ w + b, 0.0)
        ok &= out.shape == (batch, HIDDEN)
        ok &= bool(jnp.allclose(out, ref, atol=1e-5, rtol=1e-5))

    assert ok
    print("KERNEL_OK")
</pallas_src>

<mosaic_0001>
module attributes {stable_mosaic.version = 11 : i64} {
  func.func @_linear_relu_kernel(%arg0: i32, %arg1: memref<1x120xf32, #tpu.memory_space<vmem>>, %arg2: memref<120x256xf32, #tpu.memory_space<vmem>>, %arg3: memref<1x256xf32, #tpu.memory_space<vmem>>, %arg4: memref<1x256xf32, #tpu.memory_space<vmem>>) attributes {dimension_semantics = [#tpu.dimension_semantics<parallel>], iteration_bounds = array<i64: 1>, scalar_prefetch = 0 : i64, scratch_operands = 0 : i64, tpu.core_type = #tpu.core_type<tc>, window_params = [{transform_indices = @transform_0, window_bounds = array<i64: 1, 120>}, {pipeline_mode = #tpu.pipeline_mode<synchronous>, transform_indices = @transform_1, window_bounds = array<i64: 120, 256>}, {pipeline_mode = #tpu.pipeline_mode<synchronous>, transform_indices = @transform_2, window_bounds = array<i64: 1, 256>}, {transform_indices = @transform_3, window_bounds = array<i64: 1, 256>}]} {
    %c0 = arith.constant 0 : index
    %c0_0 = arith.constant 0 : index
    %0 = vector.load %arg1[%c0, %c0_0] : memref<1x120xf32, #tpu.memory_space<vmem>>, vector<1x120xf32>
    %c0_1 = arith.constant 0 : index
    %c0_2 = arith.constant 0 : index
    %1 = vector.load %arg2[%c0_1, %c0_2] : memref<120x256xf32, #tpu.memory_space<vmem>>, vector<120x256xf32>
    %cst = arith.constant dense<0.000000e+00> : vector<1x256xf32>
    %2 = tpu.matmul %0, %1, %cst {dimension_numbers = #tpu.dot_dimension_numbers<[1], [0], [0], [1], [0, 0, 1, 1], [], []>} : vector<1x120xf32>, vector<120x256xf32>, vector<1x256xf32> -> vector<1x256xf32>
    %c0_3 = arith.constant 0 : index
    %c0_4 = arith.constant 0 : index
    %3 = vector.load %arg3[%c0_3, %c0_4] : memref<1x256xf32, #tpu.memory_space<vmem>>, vector<1x256xf32>
    %4 = arith.addf %2, %3 : vector<1x256xf32>
    %cst_5 = arith.constant 0.000000e+00 : f32
    %5 = vector.broadcast %cst_5 : f32 to vector<1x256xf32>
    %6 = arith.maximumf %4, %5 : vector<1x256xf32>
    %c0_6 = arith.constant 0 : index
    %c0_7 = arith.constant 0 : index
    %7 = vector.load %arg4[%c0_6, %c0_7] : memref<1x256xf32, #tpu.memory_space<vmem>>, vector<1x256xf32>
    tpu.vector_store %arg4[%c0_6, %c0_7], %6 {strides = array<i32>} : memref<1x256xf32, #tpu.memory_space<vmem>>, vector<1x256xf32>,
    return
  }
  func.func @transform_0(%arg0: i32) -> (i32, i32) {
    %c0_i32 = arith.constant 0 : i32
    %c0_i32_0 = arith.constant 0 : i32
    return %arg0, %c0_i32 : i32, i32
  }
  func.func @transform_1(%arg0: i32) -> (i32, i32) {
    %c0_i32 = arith.constant 0 : i32
    %c0_i32_0 = arith.constant 0 : i32
    %c0_i32_1 = arith.constant 0 : i32
    return %c0_i32, %c0_i32_0 : i32, i32
  }
  func.func @transform_2(%arg0: i32) -> (i32, i32) {
    %c0_i32 = arith.constant 0 : i32
    %c0_i32_0 = arith.constant 0 : i32
    %c0_i32_1 = arith.constant 0 : i32
    return %c0_i32, %c0_i32_0 : i32, i32
  }
  func.func @transform_3(%arg0: i32) -> (i32, i32) {
    %c0_i32 = arith.constant 0 : i32
    %c0_i32_0 = arith.constant 0 : i32
    return %arg0, %c0_i32 : i32, i32
  }
}

</mosaic_0001>

<bundles_post_ra>
// kernel: tpu_custom_call.1
= control target key start
LH: loop header
LB: loop body
LE: loop exit
PB: predicated region body
PF: predicated region fallthrough
CT: control target
= control target key end

     0   :  { %8 = vsyncpa [#allocation3], 0  ;;  %s381_s0 = inlined_call_operand.hbm [shape: f32[1,120], index: 0, kind: input, shape index: {}]   ;;  %s382_s1 = inlined_call_operand.hbm [shape: f32[120,256], index: 1, kind: input, shape index: {}]   ;;  %s383_s2 = inlined_call_operand.vmem [shape: f32[1,256], index: 2, kind: input, shape index: {}]   ;;  %s384_s3 = inlined_call_operand.hbm [shape: f32[1,256], index: 3, kind: output, shape index: {}]  }
   0x1   :  { %9 = vsyncpa [#allocation6], 0 }
   0x2   :  { %10 = vsyncpa [#allocation4], 0  ;;  %s308_s12 = smov [#allocation2]   ;;  %s309_s14 = smov [#allocation5]  }
   0x3   :  { %s17_s13 = sshll.u32 %s308_s12, 4  ;;  %s26_s15 = sshll.u32 %s309_s14, 4  ;;  %s18_s13 = int_to_ptr.vmem [resolvable:$true] %s17_s13  ;;  %s335_s15 = int_to_ptr.vmem [resolvable:$true] %s26_s15 }
   0x4   :  { %s236_s18 = scalar_lea.hbm %s381_s0, 16 }
   0x5   :  { %p237_p0 = scmp.ne.s32.totalorder %s381_s0, %s236_s18  ;;  %p240_p1 = scmp.lt.u32.totalorder %s236_s18, %s381_s0 }
   0x7   :  { %p242_p2 = pnand %p240_p1, %p237_p0 }
   0x9   :  { %245 = shalt.err (!%p242_p2)
}
   0xa   :  { %s246_s23 = scalar_lea.vmem %s18_s13, 16  ;;  %s250_s24 = scalar_lea.vmem %s18_s13, 32 }
   0xb   :  { %p247_p3 = scmp.ne.s32.totalorder %s18_s13, %s246_s23  ;;  %p251_p4 = scmp.lt.s32.totalorder %s18_s13, %s18_s13 }
   0xc   :  { %p252_p5 = scmp.lt.s32.totalorder %s250_s24, %s246_s23 }
   0xe   :  { %p253_p6 = por %p252_p5, %p251_p4 }
  0x10   :  { %p254_p7 = pnand %p253_p6, %p247_p3 }
  0x12   :  { %257 = shalt.err (!%p254_p7)
}
  0x13   :  { %20 = dma.hbm_to_vmem [thread:$0]  %s381_s0, 16, %s18_s13, [#allocation3]  }
  0x14   :  { %s258_s29 = scalar_lea.hbm %s382_s1, 3840 }
  0x15   :  { %p259_p8 = scmp.ne.s32.totalorder %s382_s1, %s258_s29  ;;  %p262_p9 = scmp.lt.u32.totalorder %s258_s29, %s382_s1 }
  0x17   :  { %p264_p10 = pnand %p262_p9, %p259_p8 }
  0x19   :  { %267 = shalt.err (!%p264_p10)
}
  0x1a   :  { %s268_s7 = scalar_lea.vmem %s335_s15, 3840  ;;  %p273_p12 = scmp.lt.s32.totalorder %s335_s15, %s335_s15 }
  0x1b   :  { %p269_p11 = scmp.ne.s32.totalorder %s335_s15, %s268_s7  ;;  %p274_p13 = scmp.lt.s32.totalorder %s268_s7, %s268_s7 }
  0x1d   :  { %p275_p0 = por %p274_p13, %p273_p12 }
  0x1f   :  { %p276_p1 = pnand %p275_p0, %p269_p11 }
  0x21   :  { %279 = shalt.err (!%p276_p1)
}
  0x22   :  { %s310_s0 = smov 256   ;;  %s311_s8 = smov 16  }
  0x23   :  { %32 = dma.hbm_to_vmem [thread:$0]  %s382_s1, 3840, %s335_s15, [#allocation6], %s310_s0, %s310_s0, %s311_s8  }
  0x24   :  { %302 = dma.done.wait [#allocation3], 16  }
  0x25   :  { %303 = vsyncadd [#allocation3], 4294967280 }
  0x26   :  { %304 = dma.done.wait [#allocation6], 3840  }
  0x27   :  { %305 = vsyncadd [#allocation6], 4294963456  ;;  %v312_v0 = vmov 0.0   ;;  %v43_v1 = vld [vmem:[#allocation5 + $0x8] sm:$0xff]  ;;  %v45_v2 = vld [vmem:[#allocation5 + $0x18] sm:$0xff]  ;;  %vm84_vm0 = vcmask 982016   ;;  %v74_v46 = vlaneseq }
  0x28   :  { %152 = vmatprep.mubr.f32.mxu0 %v312_v0  ;;  %v42_v3 = vld [vmem:[#allocation5] sm:$0xff]  ;;  %v201_v4 = vpack.c.bf16 %v45_v2, %v43_v1  ;;  %v44_v5 = vld [vmem:[#allocation5 + $0x10] sm:$0xff]  ;;  %v47_v6 = vld [vmem:[#allocation5 + $0x28] sm:$0xff]  ;;  %v313_v51 = vmov 1966171168   ;;  %s314_s12 = smov [#allocation7]  }
  0x29   :  { %v49_v7 = vld [vmem:[#allocation5 + $0x38] sm:$0xff]  ;;  %v203_v8 = vpack.c.bf16 %v44_v5, %v42_v3  ;;  %v46_v10 = vld [vmem:[#allocation5 + $0x20] sm:$0xff]  ;;  %v48_v11 = vld [vmem:[#allocation5 + $0x30] sm:$0xff]  ;;  %v75_v47 = vshrl.u32 %v74_v46, 7  ;;  %v165_v52 = vunpack.c.l.s4 %v313_v51  ;;  %s190_s13 = sshll.u32 %s314_s12, 4  ;;  %vm181_vm1 = vcmp.lt.s32.totalorder %v74_v46, 256  ;;  %s191_s13 = int_to_ptr.vmem [resolvable:$true] %s190_s13 }
  0x2a   :  { %v205_v9 = vpack.c.bf16 %v49_v7, %v47_v6  ;;  %v51_v12 = vld [vmem:[#allocation5 + $0x48] sm:$0xff]  ;;  %202 = vmatprep.subr.bf16.mxu0 %v201_v4  ;;  %v53_v13 = vld [vmem:[#allocation5 + $0x58] sm:$0xff]  ;;  %v207_v14 = vpack.c.bf16 %v48_v11, %v46_v10  ;;  %v50_v16 = vld [vmem:[#allocation5 + $0x40] sm:$0xff]  ;;  %p285_p3 = scmp.lt.s32.totalorder %s191_s13, %s191_s13 }
  0x2b   :  { %204 = vmatpush1.bf16.msra.mxu0 %v203_v8  ;;  %v209_v15 = vpack.c.bf16 %v53_v13, %v51_v12  ;;  %v52_v17 = vld [vmem:[#allocation5 + $0x50] sm:$0xff]  ;;  %v55_v18 = vld [vmem:[#allocation5 + $0x68] sm:$0xff]  ;;  %v57_v19 = vld [vmem:[#allocation5 + $0x78] sm:$0xff]  ;;  %v76_v48 = vsub.s32 0, %v75_v47  ;;  %v80_v50 = vsub.s32 1, %v75_v47  ;;  %v166_v56 = vunpack.c.0.s8 %v165_v52 }
  0x2c   :  { %206 = vmatprep.subr.bf16.mxu0 %v205_v9  ;;  %v211_v20 = vpack.c.bf16 %v52_v17, %v50_v16  ;;  %v213_v21 = vpack.c.bf16 %v57_v19, %v55_v18  ;;  %v54_v22 = vld [vmem:[#allocation5 + $0x60] sm:$0xff]  ;;  %v56_v23 = vld [vmem:[#allocation5 + $0x70] sm:$0xff]  ;;  %v59_v24 = vld [vmem:[#allocation5 + $0x88] sm:$0xff] }
  0x2d   :  { %v61_v25 = vld [vmem:[#allocation5 + $0x98] sm:$0xff]  ;;  %v215_v26 = vpack.c.bf16 %v56_v23, %v54_v22  ;;  %v58_v28 = vld [vmem:[#allocation5 + $0x80] sm:$0xff]  ;;  %v60_v29 = vld [vmem:[#allocation5 + $0x90] sm:$0xff]  ;;  %v169_v62 = vsub.s32 %v166_v56, %v75_v47 }
  0x2e   :  { %v217_v27 = vpack.c.bf16 %v61_v25, %v59_v24  ;;  %v63_v30 = vld [vmem:[#allocation5 + $0xa8] sm:$0xff]  ;;  %v65_v31 = vld [vmem:[#allocation5 + $0xb8] sm:$0xff]  ;;  %v219_v32 = vpack.c.bf16 %v60_v29, %v58_v28  ;;  %v62_v34 = vld [vmem:[#allocation5 + $0xa0] sm:$0xff] }
  0x2f   :  { %208 = vmatpush1.bf16.msra.mxu0 %v207_v14  ;;  %v221_v33 = vpack.c.bf16 %v65_v31, %v63_v30  ;;  %v64_v35 = vld [vmem:[#allocation5 + $0xb0] sm:$0xff]  ;;  %v67_v36 = vld [vmem:[#allocation5 + $0xc8] sm:$0xff]  ;;  %v69_v37 = vld [vmem:[#allocation5 + $0xd8] sm:$0xff] }
  0x30   :  { %210 = vmatprep.subr.bf16.mxu0 %v209_v15  ;;  %v223_v38 = vpack.c.bf16 %v64_v35, %v62_v34  ;;  %v225_v39 = vpack.c.bf16 %v69_v37, %v67_v36  ;;  %v66_v40 = vld [vmem:[#allocation5 + $0xc0] sm:$0xff]  ;;  %v68_v41 = vld [vmem:[#allocation5 + $0xd0] sm:$0xff]  ;;  %v71_v43 = vld [vmem:[#allocation5 + $0xe8] sm:$0xff] }
  0x31   :  { %v227_v42 = vpack.c.bf16 %v68_v41, %v66_v40  ;;  %v70_v44 = vld [vmem:[#allocation5 + $0xe0] sm:$0xff]  ;;  %v41_v45 = vld [vmem:[#allocation2] sm:$0x1]  ;;  %v72_v49 = vld [vmem:[%s383_s2] sm:$0x3]  ;;  %s280_s2 = scalar_lea.vmem %s191_s13, 32 }
  0x32   :  { %v77_v53 = vrot.slane %v72_v49, %v76_v48  ;;  %v81_v54 = vrot.slane %v72_v49, %v80_v50  ;;  %p281_p2 = scmp.ne.s32.totalorder %s191_s13, %s280_s2  ;;  %p286_p4 = scmp.lt.s32.totalorder %s280_s2, %s280_s2 }
  0x33   :  { %212 = vmatpush1.bf16.msra.mxu0 %v211_v20 }
  0x34   :  { %214 = vmatprep.subr.bf16.mxu0 %v213_v21  ;;  %p287_p5 = por %p286_p4, %p285_p3 }
  0x36   :  { %p288_p6 = pnand %p287_p5, %p281_p2 }
  0x37   :  { %216 = vmatpush1.bf16.msra.mxu0 %v215_v26 }
  0x38   :  { %218 = vmatprep.subr.bf16.mxu0 %v217_v27 }
  0x3b   :  { %220 = vmatpush1.bf16.msra.mxu0 %v219_v32 }
  0x3c   :  { %222 = vmatprep.subr.bf16.mxu0 %v221_v33 }
  0x3f   :  { %224 = vmatpush1.bf16.msra.mxu0 %v223_v38 }
  0x40   :  { %226 = vmatprep.subr.bf16.mxu0 %v225_v39 }
  0x43   :  { %228 = vmatpush1.bf16.msra.mxu0 %v227_v42 }
  0x44   :  { %116 = vmatprep.subr.mxu0 %v71_v43 }
  0x47   :  { %117 = vmatpush1.msra.mxu0 %v70_v44 }
  0x48   :  { %200 = vmatmul.mubr.msk.f32.vlgmr.msra.gmra.mrb[0].mxu0 %vm84_vm0, %v41_v45 }
 0x11b   :  { %v154_v55 = vpop.f32.mrb[0].mxu0 }
 0x11c   :  { %v155_v57 = vadd.f32 %v154_v55, %v77_v53  ;;  %v156_v58 = vpop.f32.mrb[1].mxu0 }
 0x11d   :  { %v157_v59 = vadd.f32 %v156_v58, %v81_v54 }
 0x11e   :  { %v159_v60 = vmax.f32 %v155_v57, 0.0 }
 0x11f   :  { %v160_v61 = vmax.f32 %v157_v59, 0.0 }
 0x121   :  { %v163_v63 = vcombine.low %v159_v60, %v160_v61 }
 0x123   :  { %v170_v0 = vrot.slane %v163_v63, %v169_v62 }
 0x125   :  { %v177_v1 = vrot.slane %v170_v0, %v169_v62 }
 0x127   :  { %183 = vst.msk [vmem:[#allocation7] sm:$0x3] %vm181_vm1, %v177_v1 }
 0x128   :  { %291 = shalt.err (!%p288_p6)
}
 0x129   :  { %s292_s16 = scalar_lea.hbm %s384_s3, 32 }
 0x12a   :  { %p293_p7 = scmp.ne.s32.totalorder %s384_s3, %s292_s16  ;;  %p296_p8 = scmp.lt.u32.totalorder %s292_s16, %s384_s3 }
 0x12c   :  { %p298_p9 = pnand %p296_p8, %p293_p7 }
 0x12e   :  { %301 = shalt.err (!%p298_p9)
}
 0x12f   :  { %193 = dma.vmem_to_hbm [thread:$0]  %s191_s13, 32, %s384_s3, [#allocation4]  }
 0x130   :  { %306 = dma.done.wait [#allocation4], 32  }
 0x131   :  { %307 = vsyncadd [#allocation4], 4294967264 }
 0x132   :  { %197 = vsyncpa [#allocation3], 1 }
 0x133   :  { %198 = vsyncpa [#allocation6], 1 }
 0x134   :  { %199 = vsyncpa [#allocation4], 1 }

</bundles_post_ra>
